<compile_context>
chip_gen: v5e
topology: v5e:2x2
jax: 0.10.0
libtpu: 0.0.40
codegen_flags: <defaults>
</compile_context>

<pallas_src>
import functools
import math

import jax
import jax.numpy as jnp
from jax.experimental import pallas as pl
from jax.experimental.pallas import tpu as pltpu

_LANE = 128
_SUBLANE = 8


def _round_up(x, m):
    return (x + m - 1) // m * m


def _cdiv(a, b):
    return -(-a // b)


# ------------------------------- kernel body --------------------------------
def _dot_attention_kernel(span_ref, cand_ref, prior_ref, mask_ref, fill_ref,
                          wa_ref, wb_ref, wc_ref, wd_ref, b2_ref,
                          link_ref, wemb_ref, *, use_mxu_mlp):
    """One (batch, span-tile) block.

    span_ref : (tS, Dp)              cand_ref : (tS, Cp, Dp)
    prior_ref / mask_ref : (tS, Cp)  fill_ref : (1, Cp)  [-10000 real / -1e30 pad]
    MXU path (Cp*H <= 512):
        wa/wb : (Cp, Cp*H) block-diag first-layer weights (score / prior cols)
        wc    : (1, Cp*H) tiled bias          wd : (Cp*H, Cp) block-diag w2
    Per-candidate path:
        wa/wb/wc : (1, H)                      wd : (H, 1)
    b2_ref : (1,) scalar in SMEM
    link_ref : (tS, Cp)              wemb_ref : (tS, Dp)
    """
    span = span_ref[...].astype(jnp.float32)        # (tS, Dp)
    cand = cand_ref[...].astype(jnp.float32)        # (tS, Cp, Dp)
    prior = prior_ref[...]                          # (tS, Cp)
    mask = mask_ref[...]                            # (tS, Cp)

    # scores[s, c] = <span[s], cand[s, c]>   (the 1/sqrt(D) scale is folded
    # into the first-layer weight column wrapper-side).
    scores = jnp.sum(span[:, None, :] * cand, axis=-1)            # (tS, Cp)

    if use_mxu_mlp:
        # 2 -> H -> 1 MLP as lane-dense block-diagonal matmuls on the MXU.
        hidden = jnp.maximum(
            jnp.dot(scores, wa_ref[...], preferred_element_type=jnp.float32)
            + jnp.dot(prior, wb_ref[...], preferred_element_type=jnp.float32)
            + wc_ref[...],
            0.0)                                                   # (tS, Cp*H)
        link = (jnp.dot(hidden, wd_ref[...],
                        preferred_element_type=jnp.float32)
                + b2_ref[0])                                       # (tS, Cp)
    else:
        # Per-candidate path: no (tS, Cp*H) slab, no kron-wasted MXU flops.
        w1s = wa_ref[...]                                          # (1, H)
        w1p = wb_ref[...]                                          # (1, H)
        b1 = wc_ref[...]                                           # (1, H)
        w2 = wd_ref[...]                                           # (H, 1)
        cols = []
        for c in range(prior.shape[-1]):
            h_c = jnp.maximum(scores[:, c][:, None] * w1s
                              + prior[:, c][:, None] * w1p + b1, 0.0)
            cols.append(jnp.dot(h_c, w2, preferred_element_type=jnp.float32))
        link = jnp.concatenate(cols, axis=-1) + b2_ref[0]          # (tS, Cp)

    # Invalid real candidates -> -10000 (PyTorch convention); padded candidate
    # lanes -> -1e30 so they get exactly zero softmax weight, which makes the
    # all-masked-row case reduce to a uniform softmax over the *real* C only.
    link = jnp.where(mask > 0.0, link, fill_ref[...])
    link_ref[...] = link

    # Softmax over candidates (exact normalization; pl.reciprocal(approx=True)
    # was dropped per the correctness review).
    m = jnp.max(link, axis=-1, keepdims=True)
    p = jnp.exp(link - m)
    normed = p / jnp.sum(p, axis=-1, keepdims=True)

    # Weighted candidate embeddings; padded cand rows/lanes are zero.
    wemb_ref[...] = jnp.sum(normed[:, :, None] * cand, axis=1)     # (tS, Dp)


# --------------------------- VMEM budgeting ---------------------------------
def _vmem_budget_and_limit():
    """(tile-footprint budget, scoped-VMEM limit) per TensorCore."""
    try:
        cap = int(pltpu.get_tpu_info().vmem_capacity_bytes)
    except Exception:
        cap = 64 * 1024 * 1024                      # conservative: v7x per-TC
    budget = min(48 * 1024 * 1024, int(cap * 0.625))   # ~48MiB v5e/v6e, ~40MiB v7x
    limit = min(int(cap * 0.875), budget + 16 * 1024 * 1024)
    return budget, limit


def _padded_row_bytes(Cp, Dp, hidden_width, in_bytes):
    """Padded VMEM bytes per span row (inputs/outputs double-buffered + temps)."""
    c_lanes = _round_up(Cp, _LANE)         # every (tS, Cp) tile pads Cp -> 128 lanes
    h_lanes = _round_up(hidden_width, _LANE)
    # double-buffered inputs: cand + span (storage dtype), prior + mask (f32, padded)
    in_row = (Cp * Dp + Dp) * in_bytes + 2 * c_lanes * 4
    # double-buffered outputs: link (lane-padded) + wemb (lane dense)
    out_row = (c_lanes + Dp) * 4
    # single-copy temporaries: f32 upcast of cand, two (Cp, Dp) broadcast
    # products, the hidden slab, scores/link/p/normed rows
    tmp_row = 3 * Cp * Dp * 4 + h_lanes * 4 + 4 * c_lanes * 4
    return 2 * (in_row + out_row) + tmp_row


def _fixed_bytes(Cp, hidden_width, use_mxu_mlp):
    """Grid-invariant weight constants (assumed double-buffered) + headroom."""
    c_lanes = _round_up(Cp, _LANE)
    h_lanes = _round_up(hidden_width, _LANE)
    if use_mxu_mlp:
        w = (2 * _round_up(Cp, _SUBLANE) * h_lanes           # wa, wb
             + _SUBLANE * h_lanes                            # wc
             + _round_up(hidden_width, _SUBLANE) * c_lanes)  # wd
    else:
        w = 3 * _SUBLANE * h_lanes + _round_up(hidden_width, _SUBLANE) * _LANE
    w += _SUBLANE * c_lanes                                  # fill row
    return 2 * 4 * w + 2 * 1024 * 1024                       # + misc headroom


def _pick_span_tile(S, B, row_bytes, fixed_bytes, budget_bytes):
    """Largest span tile whose padded, double-buffered footprint fits."""
    cap = max(_SUBLANE, (budget_bytes - fixed_bytes) // row_bytes)
    cap = max(_SUBLANE, (cap // _SUBLANE) * _SUBLANE)
    n_tiles = max(1, _cdiv(S, cap))
    # v7x has 2 TensorCores: keep >= 2 parallel grid steps when batch == 1.
    if B == 1 and n_tiles < 2 and S > _SUBLANE:
        n_tiles = 2
    tS = max(_SUBLANE, _round_up(_cdiv(S, n_tiles), _SUBLANE))
    Sp = tS * _cdiv(S, tS)
    return tS, Sp


# --------------------------------- wrapper -----------------------------------
def dot_attention_with_prior(span, cand, prior, mask, params,
                             span_tile=None, compute_dtype=None):
    """Pallas implementation of DotAttentionWithPrior.forward
    (weighted_entity_threshold=None path).

    span  : (B, S, D)       cand : (B, S, C, D)
    prior : (B, S, C)       mask : (B, S, C) 0/1
    params: dict with w1 (H, 2), b1 (H,), w2 (1, H), b2 (1,)
    compute_dtype: storage dtype for span/cand in HBM (None -> float32;
      jnp.bfloat16 halves the dominant cand HBM traffic).
    """
    B, S, D = span.shape
    C = cand.shape[2]
    H = params["w1"].shape[0]

    cdt = jnp.dtype(compute_dtype) if compute_dtype is not None else jnp.dtype(jnp.float32)
    in_bytes = cdt.itemsize

    # --- padded, lane/sublane-dense shapes ---------------------------------
    Dp = _round_up(D, _LANE)
    Cp = _round_up(C, _SUBLANE)
    use_mxu_mlp = (Cp * H) <= 512
    hidden_width = Cp * H if use_mxu_mlp else H

    # --- tile sizing against the padded VMEM footprint ---------------------
    budget, vmem_limit = _vmem_budget_and_limit()
    row_bytes = _padded_row_bytes(Cp, Dp, hidden_width, in_bytes)
    fixed_bytes = _fixed_bytes(Cp, hidden_width, use_mxu_mlp)
    if span_tile is None:
        tS, Sp = _pick_span_tile(S, B, row_bytes, fixed_bytes, budget)
    else:
        tS = span_tile
        Sp = tS * _cdiv(S, tS)
    est_bytes = fixed_bytes + tS * row_bytes
    # Only raise the scoped-VMEM limit when the tile actually needs it.
    vmem_limit = int(vmem_limit) if est_bytes > 12 * 1024 * 1024 else None

    # --- pad inputs (zeros; padded candidates carry mask=0) ----------------
    span_p = jnp.pad(span.astype(cdt), ((0, 0), (0, Sp - S), (0, Dp - D)))
    cand_p = jnp.pad(cand.astype(cdt),
                     ((0, 0), (0, Sp - S), (0, Cp - C), (0, Dp - D)))
    prior_p = jnp.pad(prior.astype(jnp.float32),
                      ((0, 0), (0, Sp - S), (0, Cp - C)))
    mask_p = jnp.pad(mask.astype(jnp.float32),
                     ((0, 0), (0, Sp - S), (0, Cp - C)))
    # Mask-fill row: -10000 for real candidates, -1e30 for padded lanes.
    fill = jnp.where(jnp.arange(Cp) < C, jnp.float32(-10000.0),
                     jnp.float32(-1e30))[None, :]                    # (1, Cp)

    # --- parameter repacking (pure layout plumbing, done once) -------------
    w1 = params["w1"].astype(jnp.float32)                 # (H, 2)
    b1 = params["b1"].astype(jnp.float32)                 # (H,)
    w2 = params["w2"].astype(jnp.float32).reshape(H)      # (H,)
    b2 = params["b2"].astype(jnp.float32).reshape(1)      # (1,)
    w1s = w1[:, 0] / math.sqrt(D)                         # fold 1/sqrt(D)
    w1p = w1[:, 1]
    if use_mxu_mlp:
        eye = jnp.eye(Cp, dtype=jnp.float32)
        wa = jnp.kron(eye, w1s[None, :])                  # (Cp, Cp*H)
        wb = jnp.kron(eye, w1p[None, :])                  # (Cp, Cp*H)
        wc = jnp.tile(b1, Cp)[None, :]                    # (1, Cp*H)
        wd = jnp.kron(eye, w2[:, None])                   # (Cp*H, Cp)
    else:
        wa = w1s[None, :]                                 # (1, H)
        wb = w1p[None, :]                                 # (1, H)
        wc = b1[None, :]                                  # (1, H)
        wd = w2[:, None]                                  # (H, 1)

    # --- grid: larger parallel axis outermost (v7x megacore sharding) ------
    num_s = Sp // tS
    s_major = num_s >= B
    grid = (num_s, B) if s_major else (B, num_s)

    def _bs(i, j):
        return (j, i) if s_major else (i, j)

    def _map3(i, j):
        b, s = _bs(i, j)
        return (b, s, 0)

    def _map4(i, j):
        b, s = _bs(i, j)
        return (b, s, 0, 0)

    def _const(i, j):
        return (0, 0)

    in_specs = [
        pl.BlockSpec((None, tS, Dp), _map3),                # span
        pl.BlockSpec((None, tS, Cp, Dp), _map4),            # cand
        pl.BlockSpec((None, tS, Cp), _map3),                # prior
        pl.BlockSpec((None, tS, Cp), _map3),                # mask
        pl.BlockSpec((1, Cp), _const),                      # fill row
        pl.BlockSpec(wa.shape, _const),                     # wa
        pl.BlockSpec(wb.shape, _const),                     # wb
        pl.BlockSpec(wc.shape, _const),                     # wc
        pl.BlockSpec(wd.shape, _const),                     # wd
        pl.BlockSpec(memory_space=pltpu.MemorySpace.SMEM),  # b2 scalar
    ]
    out_specs = (
        pl.BlockSpec((None, tS, Cp), _map3),                # linking scores
        pl.BlockSpec((None, tS, Dp), _map3),                # weighted embeddings
    )
    out_shape = (
        jax.ShapeDtypeStruct((B, Sp, Cp), jnp.float32),
        jax.ShapeDtypeStruct((B, Sp, Dp), jnp.float32),
    )

    kernel = functools.partial(_dot_attention_kernel, use_mxu_mlp=use_mxu_mlp)
    link_p, wemb_p = pl.pallas_call(
        kernel,
        grid=grid,
        in_specs=in_specs,
        out_specs=out_specs,
        out_shape=out_shape,
        compiler_params=pltpu.CompilerParams(
            dimension_semantics=("parallel", "parallel"),
            vmem_limit_bytes=vmem_limit),
    )(span_p, cand_p, prior_p, mask_p, fill, wa, wb, wc, wd, b2)

    # TODO(synk): weighted_entity_threshold / null_embedding substitution path
    # not implemented (module default is weighted_entity_threshold=None).
    return {"linking_scores": link_p[:, :S, :C],
            "weighted_entity_embeddings": wemb_p[:, :S, :D]}


# ------------------------------- reference ----------------------------------
def _reference(span, cand, prior, mask, params):
    """Pure-JAX reference mirroring the PyTorch forward."""
    D = cand.shape[-1]
    scores = jnp.sum(span[:, :, None, :] * cand, axis=-1) / math.sqrt(D)
    feats = jnp.stack([scores, prior], axis=-1)                    # (B,S,C,2)
    h = jax.nn.relu(feats @ params["w1"].T + params["b1"])         # (B,S,C,H)
    link = (h @ params["w2"].T + params["b2"])[..., 0]             # (B,S,C)
    link = jnp.where(mask > 0, link, -10000.0)
    normed = jax.nn.softmax(link, axis=-1)
    weighted = jnp.sum(normed[..., None] * cand, axis=2)
    return {"linking_scores": link, "weighted_entity_embeddings": weighted}


if __name__ == "__main__":
    # Small shapes: batch=2, num_spans=8, num_candidates=4, entity_dim=32, hidden=32
    B, S, C, D, H = 2, 8, 4, 32, 32

    key = jax.random.PRNGKey(0)
    k_span, k_cand, k_prior, k_w1, k_w2 = jax.random.split(key, 5)

    span = jax.random.normal(k_span, (B, S, D), dtype=jnp.float32)
    cand = jax.random.normal(k_cand, (B, S, C, D), dtype=jnp.float32)
    prior_logits = jax.random.normal(k_prior, (B, S, C), dtype=jnp.float32)
    prior = jax.nn.softmax(prior_logits, axis=-1)
    mask = (jax.random.uniform(k_prior, (B, S, C)) > 0.3).astype(jnp.float32)
    mask = mask.at[:, :, 0].set(1.0)   # candidate 0 always valid

    # init_bert_weights: Linear weights ~ N(0, 0.02), biases zero.
    initializer_range = 0.02
    params = {
        "w1": initializer_range * jax.random.normal(k_w1, (H, 2), dtype=jnp.float32),
        "b1": jnp.zeros((H,), dtype=jnp.float32),
        "w2": initializer_range * jax.random.normal(k_w2, (1, H), dtype=jnp.float32),
        "b2": jnp.zeros((1,), dtype=jnp.float32),
    }

    ref = _reference(span, cand, prior, mask, params)

    # f32 storage path (module semantics, tight tolerance — MXU MLP matmuls
    # are the only reduced-precision component).
    out = dot_attention_with_prior(span, cand, prior, mask, params)
    jax.block_until_ready(out)
    assert jnp.allclose(out["linking_scores"], ref["linking_scores"],
                        atol=1e-3, rtol=1e-3), "f32 linking_scores mismatch"
    assert jnp.allclose(out["weighted_entity_embeddings"],
                        ref["weighted_entity_embeddings"],
                        atol=2e-3, rtol=2e-3), "f32 weighted_entity_embeddings mismatch"

    # bf16 storage path (~2x less cand HBM traffic; looser tolerance).
    out_bf16 = dot_attention_with_prior(span, cand, prior, mask, params,
                                        compute_dtype=jnp.bfloat16)
    jax.block_until_ready(out_bf16)
    assert jnp.allclose(out_bf16["linking_scores"], ref["linking_scores"],
                        atol=2e-2, rtol=2e-2), "bf16 linking_scores mismatch"
    assert jnp.allclose(out_bf16["weighted_entity_embeddings"],
                        ref["weighted_entity_embeddings"],
                        atol=5e-2, rtol=5e-2), "bf16 weighted_entity_embeddings mismatch"

    print("KERNEL_OK")
</pallas_src>

<mosaic_0001>
module attributes {stable_mosaic.version = 11 : i64} {
  func.func @_dot_attention_kernel(%arg0: i32, %arg1: i32, %arg2: memref<1x8x128xf32, #tpu.memory_space<vmem>>, %arg3: memref<1x8x8x128xf32, #tpu.memory_space<vmem>>, %arg4: memref<1x8x8xf32, #tpu.memory_space<vmem>>, %arg5: memref<1x8x8xf32, #tpu.memory_space<vmem>>, %arg6: memref<1x8xf32, #tpu.memory_space<vmem>>, %arg7: memref<8x256xf32, #tpu.memory_space<vmem>>, %arg8: memref<8x256xf32, #tpu.memory_space<vmem>>, %arg9: memref<1x256xf32, #tpu.memory_space<vmem>>, %arg10: memref<256x8xf32, #tpu.memory_space<vmem>>, %arg11: memref<1xf32, #tpu.memory_space<smem>>, %arg12: memref<1x8x8xf32, #tpu.memory_space<vmem>>, %arg13: memref<1x8x128xf32, #tpu.memory_space<vmem>>) attributes {dimension_semantics = [#tpu.dimension_semantics<parallel>, #tpu.dimension_semantics<parallel>], iteration_bounds = array<i64: 2, 1>, scalar_prefetch = 0 : i64, scratch_operands = 0 : i64, tpu.core_type = #tpu.core_type<tc>, window_params = [{transform_indices = @transform_0, window_bounds = array<i64: 1, 8, 128>}, {transform_indices = @transform_1, window_bounds = array<i64: 1, 8, 8, 128>}, {transform_indices = @transform_2, window_bounds = array<i64: 1, 8, 8>}, {transform_indices = @transform_3, window_bounds = array<i64: 1, 8, 8>}, {pipeline_mode = #tpu.pipeline_mode<synchronous>, transform_indices = @transform_4, window_bounds = array<i64: 1, 8>}, {pipeline_mode = #tpu.pipeline_mode<synchronous>, transform_indices = @transform_5, window_bounds = array<i64: 8, 256>}, {pipeline_mode = #tpu.pipeline_mode<synchronous>, transform_indices = @transform_6, window_bounds = array<i64: 8, 256>}, {pipeline_mode = #tpu.pipeline_mode<synchronous>, transform_indices = @transform_7, window_bounds = array<i64: 1, 256>}, {pipeline_mode = #tpu.pipeline_mode<synchronous>, transform_indices = @transform_8, window_bounds = array<i64: 256, 8>}, {transform_indices = @transform_9, window_bounds = array<i64: 1>}, {transform_indices = @transform_10, window_bounds = array<i64: 1, 8, 8>}, {transform_indices = @transform_11, window_bounds = array<i64: 1, 8, 128>}]} {
    %c0 = arith.constant 0 : index
    %c0_0 = arith.constant 0 : index
    %c0_1 = arith.constant 0 : index
    %0 = vector.load %arg2[%c0, %c0_0, %c0_1] : memref<1x8x128xf32, #tpu.memory_space<vmem>>, vector<1x8x128xf32>
    %1 = vector.shape_cast %0 : vector<1x8x128xf32> to vector<8x128xf32>
    %c0_2 = arith.constant 0 : index
    %c0_3 = arith.constant 0 : index
    %c0_4 = arith.constant 0 : index
    %c0_5 = arith.constant 0 : index
    %2 = vector.load %arg3[%c0_2, %c0_3, %c0_4, %c0_5] : memref<1x8x8x128xf32, #tpu.memory_space<vmem>>, vector<1x8x8x128xf32>
    %3 = vector.shape_cast %2 : vector<1x8x8x128xf32> to vector<8x8x128xf32>
    %c0_6 = arith.constant 0 : index
    %c0_7 = arith.constant 0 : index
    %c0_8 = arith.constant 0 : index
    %4 = vector.load %arg4[%c0_6, %c0_7, %c0_8] : memref<1x8x8xf32, #tpu.memory_space<vmem>>, vector<1x8x8xf32>
    %5 = vector.shape_cast %4 : vector<1x8x8xf32> to vector<8x8xf32>
    %c0_9 = arith.constant 0 : index
    %c0_10 = arith.constant 0 : index
    %c0_11 = arith.constant 0 : index
    %6 = vector.load %arg5[%c0_9, %c0_10, %c0_11] : memref<1x8x8xf32, #tpu.memory_space<vmem>>, vector<1x8x8xf32>
    %7 = vector.shape_cast %6 : vector<1x8x8xf32> to vector<8x8xf32>
    %8 = vector.shape_cast %1 : vector<8x128xf32> to vector<8x1x128xf32>
    %9 = vector.broadcast %8 : vector<8x1x128xf32> to vector<8x8x128xf32>
    %10 = arith.mulf %9, %3 : vector<8x8x128xf32>
    %cst = arith.constant dense<0.000000e+00> : vector<8x8xf32>
    %11 = vector.multi_reduction <add>, %10, %cst [2] : vector<8x8x128xf32> to vector<8x8xf32>
    %c0_12 = arith.constant 0 : index
    %c0_13 = arith.constant 0 : index
    %12 = vector.load %arg7[%c0_12, %c0_13] : memref<8x256xf32, #tpu.memory_space<vmem>>, vector<8x256xf32>
    %cst_14 = arith.constant dense<0.000000e+00> : vector<8x256xf32>
    %13 = tpu.matmul %11, %12, %cst_14 {dimension_numbers = #tpu.dot_dimension_numbers<[1], [0], [0], [1], [0, 0, 1, 1], [], []>} : vector<8x8xf32>, vector<8x256xf32>, vector<8x256xf32> -> vector<8x256xf32>
    %c0_15 = arith.constant 0 : index
    %c0_16 = arith.constant 0 : index
    %14 = vector.load %arg8[%c0_15, %c0_16] : memref<8x256xf32, #tpu.memory_space<vmem>>, vector<8x256xf32>
    %cst_17 = arith.constant dense<0.000000e+00> : vector<8x256xf32>
    %15 = tpu.matmul %5, %14, %cst_17 {dimension_numbers = #tpu.dot_dimension_numbers<[1], [0], [0], [1], [0, 0, 1, 1], [], []>} : vector<8x8xf32>, vector<8x256xf32>, vector<8x256xf32> -> vector<8x256xf32>
    %16 = arith.addf %13, %15 : vector<8x256xf32>
    %c0_18 = arith.constant 0 : index
    %c0_19 = arith.constant 0 : index
    %17 = vector.load %arg9[%c0_18, %c0_19] : memref<1x256xf32, #tpu.memory_space<vmem>>, vector<1x256xf32>
    %18 = vector.broadcast %17 : vector<1x256xf32> to vector<8x256xf32>
    %19 = arith.addf %16, %18 : vector<8x256xf32>
    %cst_20 = arith.constant 0.000000e+00 : f32
    %20 = vector.broadcast %cst_20 : f32 to vector<8x256xf32>
    %21 = arith.maximumf %19, %20 : vector<8x256xf32>
    %c0_21 = arith.constant 0 : index
    %c0_22 = arith.constant 0 : index
    %22 = vector.load %arg10[%c0_21, %c0_22] : memref<256x8xf32, #tpu.memory_space<vmem>>, vector<256x8xf32>
    %cst_23 = arith.constant dense<0.000000e+00> : vector<8x8xf32>
    %23 = tpu.matmul %21, %22, %cst_23 {dimension_numbers = #tpu.dot_dimension_numbers<[1], [0], [0], [1], [0, 0, 1, 1], [], []>} : vector<8x256xf32>, vector<256x8xf32>, vector<8x8xf32> -> vector<8x8xf32>
    %c0_24 = arith.constant 0 : index
    %24 = memref.load %arg11[%c0_24] : memref<1xf32, #tpu.memory_space<smem>>
    %25 = vector.broadcast %24 : f32 to vector<8x8xf32>
    %26 = arith.addf %23, %25 : vector<8x8xf32>
    %cst_25 = arith.constant 0.000000e+00 : f32
    %27 = vector.broadcast %cst_25 : f32 to vector<8x8xf32>
    %28 = arith.cmpf ogt, %7, %27 : vector<8x8xf32>
    %c0_26 = arith.constant 0 : index
    %c0_27 = arith.constant 0 : index
    %29 = vector.load %arg6[%c0_26, %c0_27] : memref<1x8xf32, #tpu.memory_space<vmem>>, vector<1x8xf32>
    %30 = vector.shape_cast %29 : vector<1x8xf32> to vector<1x8xf32>
    %31 = vector.broadcast %30 : vector<1x8xf32> to vector<8x8xf32>
    %32 = arith.select %28, %26, %31 : vector<8x8xi1>, vector<8x8xf32>
    %c0_28 = arith.constant 0 : index
    %c0_29 = arith.constant 0 : index
    %c0_30 = arith.constant 0 : index
    %33 = vector.load %arg12[%c0_28, %c0_29, %c0_30] : memref<1x8x8xf32, #tpu.memory_space<vmem>>, vector<1x8x8xf32>
    %34 = vector.shape_cast %33 : vector<1x8x8xf32> to vector<8x8xf32>
    %35 = vector.shape_cast %32 : vector<8x8xf32> to vector<1x8x8xf32>
    tpu.vector_store %arg12[%c0_28, %c0_29, %c0_30], %35 {strides = array<i32>} : memref<1x8x8xf32, #tpu.memory_space<vmem>>, vector<1x8x8xf32>,
    %cst_31 = arith.constant dense<0xFF800000> : vector<8xf32>
    %36 = vector.multi_reduction <maximumf>, %32, %cst_31 [1] : vector<8x8xf32> to vector<8xf32>
    %37 = vector.shape_cast %36 : vector<8xf32> to vector<8x1xf32>
    %38 = vector.broadcast %37 : vector<8x1xf32> to vector<8x8xf32>
    %39 = arith.subf %32, %38 : vector<8x8xf32>
    %40 = math.exp %39 : vector<8x8xf32>
    %cst_32 = arith.constant dense<0.000000e+00> : vector<8xf32>
    %41 = vector.multi_reduction <add>, %40, %cst_32 [1] : vector<8x8xf32> to vector<8xf32>
    %42 = vector.shape_cast %41 : vector<8xf32> to vector<8x1xf32>
    %43 = vector.broadcast %42 : vector<8x1xf32> to vector<8x8xf32>
    %44 = arith.divf %40, %43 : vector<8x8xf32>
    %45 = vector.shape_cast %44 : vector<8x8xf32> to vector<8x8x1xf32>
    %46 = vector.broadcast %45 : vector<8x8x1xf32> to vector<8x8x128xf32>
    %47 = arith.mulf %46, %3 : vector<8x8x128xf32>
    %cst_33 = arith.constant dense<0.000000e+00> : vector<8x128xf32>
    %48 = vector.multi_reduction <add>, %47, %cst_33 [1] : vector<8x8x128xf32> to vector<8x128xf32>
    %c0_34 = arith.constant 0 : index
    %c0_35 = arith.constant 0 : index
    %c0_36 = arith.constant 0 : index
    %49 = vector.load %arg13[%c0_34, %c0_35, %c0_36] : memref<1x8x128xf32, #tpu.memory_space<vmem>>, vector<1x8x128xf32>
    %50 = vector.shape_cast %49 : vector<1x8x128xf32> to vector<8x128xf32>
    %51 = vector.shape_cast %48 : vector<8x128xf32> to vector<1x8x128xf32>
    tpu.vector_store %arg13[%c0_34, %c0_35, %c0_36], %51 {strides = array<i32>} : memref<1x8x128xf32, #tpu.memory_space<vmem>>, vector<1x8x128xf32>,
    return
  }
  func.func @transform_0(%arg0: i32, %arg1: i32) -> (i32, i32, i32) {
    %c0_i32 = arith.constant 0 : i32
    %c0_i32_0 = arith.constant 0 : i32
    return %arg0, %arg1, %c0_i32 : i32, i32, i32
  }
  func.func @transform_1(%arg0: i32, %arg1: i32) -> (i32, i32, i32, i32) {
    %c0_i32 = arith.constant 0 : i32
    %c0_i32_0 = arith.constant 0 : i32
    %c0_i32_1 = arith.constant 0 : i32
    return %arg0, %arg1, %c0_i32, %c0_i32_0 : i32, i32, i32, i32
  }
  func.func @transform_2(%arg0: i32, %arg1: i32) -> (i32, i32, i32) {
    %c0_i32 = arith.constant 0 : i32
    %c0_i32_0 = arith.constant 0 : i32
    return %arg0, %arg1, %c0_i32 : i32, i32, i32
  }
  func.func @transform_3(%arg0: i32, %arg1: i32) -> (i32, i32, i32) {
    %c0_i32 = arith.constant 0 : i32
    %c0_i32_0 = arith.constant 0 : i32
    return %arg0, %arg1, %c0_i32 : i32, i32, i32
  }
  func.func @transform_4(%arg0: i32, %arg1: i32) -> (i32, i32) {
    %c0_i32 = arith.constant 0 : i32
    %c0_i32_0 = arith.constant 0 : i32
    %c0_i32_1 = arith.constant 0 : i32
    return %c0_i32, %c0_i32_0 : i32, i32
  }
  func.func @transform_5(%arg0: i32, %arg1: i32) -> (i32, i32) {
    %c0_i32 = arith.constant 0 : i32
    %c0_i32_0 = arith.constant 0 : i32
    %c0_i32_1 = arith.constant 0 : i32
    return %c0_i32, %c0_i32_0 : i32, i32
  }
  func.func @transform_6(%arg0: i32, %arg1: i32) -> (i32, i32) {
    %c0_i32 = arith.constant 0 : i32
    %c0_i32_0 = arith.constant 0 : i32
    %c0_i32_1 = arith.constant 0 : i32
    return %c0_i32, %c0_i32_0 : i32, i32
  }
  func.func @transform_7(%arg0: i32, %arg1: i32) -> (i32, i32) {
    %c0_i32 = arith.constant 0 : i32
    %c0_i32_0 = arith.constant 0 : i32
    %c0_i32_1 = arith.constant 0 : i32
    return %c0_i32, %c0_i32_0 : i32, i32
  }
  func.func @transform_8(%arg0: i32, %arg1: i32) -> (i32, i32) {
    %c0_i32 = arith.constant 0 : i32
    %c0_i32_0 = arith.constant 0 : i32
    %c0_i32_1 = arith.constant 0 : i32
    return %c0_i32, %c0_i32_0 : i32, i32
  }
  func.func @transform_9(%arg0: i32, %arg1: i32) -> i32 {
    %c0_i32 = arith.constant 0 : i32
    %c0_i32_0 = arith.constant 0 : i32
    return %c0_i32 : i32
  }
  func.func @transform_10(%arg0: i32, %arg1: i32) -> (i32, i32, i32) {
    %c0_i32 = arith.constant 0 : i32
    %c0_i32_0 = arith.constant 0 : i32
    return %arg0, %arg1, %c0_i32 : i32, i32, i32
  }
  func.func @transform_11(%arg0: i32, %arg1: i32) -> (i32, i32, i32) {
    %c0_i32 = arith.constant 0 : i32
    %c0_i32_0 = arith.constant 0 : i32
    return %arg0, %arg1, %c0_i32 : i32, i32, i32
  }
}

</mosaic_0001>

<bundles_post_ra>
// kernel: tpu_custom_call.1
= control target key start
LH: loop header
LB: loop body
LE: loop exit
PB: predicated region body
PF: predicated region fallthrough
CT: control target
= control target key end

     0   :  { %s1714_s0 = inlined_call_operand.vmem [shape: f32[2,8,128], index: 0, kind: input, shape index: {}]   ;;  %s1715_s1 = inlined_call_operand.vmem [shape: f32[2,8,8,128], index: 1, kind: input, shape index: {}]   ;;  %s1716_s2 = inlined_call_operand.vmem [shape: f32[2,8,8], index: 2, kind: input, shape index: {}]   ;;  %s1717_s3 = inlined_call_operand.vmem [shape: f32[2,8,8], index: 3, kind: input, shape index: {}]   ;;  %s1718_s4 = inlined_call_operand.vmem [shape: f32[1,8], index: 4, kind: input, shape index: {}]   ;;  %s1719_s5 = inlined_call_operand.vmem [shape: f32[8,256], index: 5, kind: input, shape index: {}]   ;;  %s1720_s6 = inlined_call_operand.vmem [shape: f32[8,256], index: 6, kind: input, shape index: {}]   ;;  %s1721_s7 = inlined_call_operand.vmem [shape: f32[1,256], index: 7, kind: input, shape index: {}]   ;;  %s1722_s8 = inlined_call_operand.vmem [shape: f32[256,8], index: 8, kind: input, shape index: {}]   ;;  %s1723_s9 = inlined_call_operand.<no memory space> [shape: f32[1], index: 9, kind: input, shape index: {}]   ;;  %s1724_s10 = inlined_call_operand.hbm [shape: f32[2,8,8], index: 10, kind: output, shape index: {0}]   ;;  %s1725_s11 = inlined_call_operand.hbm [shape: f32[2,8,128], index: 11, kind: output, shape index: {1}]  }
   0x1   :  { %1727 = sst [smem:[#allocation9_spill]] %s1714_s0 }
   0x2   :  { %1728 = sst [smem:[#allocation10_spill]] %s1715_s1 }
   0x3   :  { %1729 = sst [smem:[#allocation11_spill]] %s1716_s2 }
   0x4   :  { %1730 = sst [smem:[#allocation12_spill]] %s1717_s3 }
   0x5   :  { %1731 = sst [smem:[#allocation13_spill]] %s1718_s4 }
   0x6   :  { %1732 = sst [smem:[#allocation14_spill]] %s1719_s5 }
   0x7   :  { %17 = sst [smem:[#allocation2]] %s1723_s9 }
   0x8   :  { %18 = vsyncpa [#allocation4], 0 }
   0x9   :  { %20 = vsyncpa [#allocation4 + $0x1], 0 }
   0xa   :  { %21 = vsyncpa [#allocation6], 0 }
   0xb   :  { %23 = vsyncpa [#allocation6 + $0x1], 0  ;;  %s1394_s19 = smov 0   ;;  %s1396_s20 = smov 0  }
   0xc   :  { %s1398_s21 = smov 0   ;;  %s1400_s22 = smov 0  }
   0xd   :  { %s1402_s23 = smov 0   ;;  %s1404_s24 = smov 0  }
   0xe LB: > { %s1128_s9 = sadd.s32 4294967295, %s1329_s24   ;;  %s1129_s25 = sadd.s32 4294967294, %s1329_s24   ;;  %s1329_s24 = sphi %s1404_s24, %s29_s24   ;;  %s1325_s23 = sphi %s1402_s23, %s1746_s23   ;;  %s1321_s22 = sphi %s1400_s22, %s1745_s22   ;;  %s1317_s21 = sphi %s1398_s21, %s1744_s21   ;;  %s1313_s20 = sphi %s1396_s20, %s1743_s20   ;;  %s1309_s19 = sphi %s1394_s19, %s1742_s19  }
   0xf   : > { %s41_s26 = sadd.s32 1, %s1325_s23  ;;  %s288_s27 = sadd.s32 1, %s1317_s21 }
  0x10   : > { %p43_p0 = scmp.ge.s32.totalorder %s41_s26, 2  ;;  %p298_p1 = scmp.ne.s32.totalorder %s1317_s21, %s1313_s20 }
  0x11   : > { %p299_p2 = scmp.eq.s32.totalorder %s1128_s9, 1  ;;  %p304_p3 = scmp.ne.s32.totalorder %s1313_s20, %s1309_s19 }
  0x12   : > { %s1748_s26 = smov (%p43_p0, %s41_s26), 0  ;;  %p305_p5 = scmp.eq.s32.totalorder %s1129_s25, 1 }
  0x13   : > { %p1434_p4 = por %p299_p2, %p298_p1  ;;  %s283_s29 = ssub.s32 %s1325_s23, %s1748_s26 }
  0x14   : > { %p1132_p6 = scmp.ge.s32.totalorder %s1329_s24, 1  ;;  %p286_p7 = scmp.eq.s32.totalorder %s283_s29, 0 }
  0x15   : > { %p1441_p8 = por %p305_p5, %p304_p3  ;;  %p412_p9 = scmp.lt.s32.totalorder %s1329_s24, 3 }
  0x16   : > { %s1447_s12 = scalar_select %p286_p7, %s1317_s21, %s288_s27  }
  0x17   : > { %p413_p10 = pnand %p1132_p6, %p412_p9 }
  0x18   : > { %p482_p11 = scmp.lt.s32.totalorder (!%p413_p10), %s1321_s22, 1  ;;  %s1735_s0 = sld [smem:[#allocation9_spill]] (!%p413_p10) }
  0x19   : > { %416 = sbr.rel (%p413_p10) target bundleno = 862 (0x35e), region = 60  ;;  %s1736_s1 = sld [smem:[#allocation10_spill]] (!%p413_p10) }
  0x1a   : > { %s1737_s2 = sld [smem:[#allocation11_spill]] (!%p413_p10)  ;;  %s1626_s16 = sand.u32 (!%p413_p10), 1, %s1313_s20  }
  0x1b   : > { %s1738_s5 = sld [smem:[#allocation14_spill]] (!%p413_p10)  ;;  %s1726_s17 = sshll.u32 (!%p413_p10), %s1626_s16, 3 }
  0x1c   : > { %s736_s25 = sld [smem:[#allocation2]] (!%p413_p10) }
  0x1d   : > { %s1739_s3 = sld [smem:[#allocation12_spill]] (!%p413_p10) }
  0x1e   : > { %s483_s13 = scalar_select %p482_p11, %s1321_s22, 1  ;;  %v574_v32 = vld [vmem:[%s1720_s6] sm:$0xff]  ;;  %v575_v33 = vld [vmem:[%s1720_s6 + $0x8] sm:$0xff]  ;;  %vm576_vm0 = vcmask 64512   ;;  %v719_v37 = vld [vmem:[%s1722_s8 + $0x78] sm:$0xff]  ;;  %v628_v52 = vlaneseq  ;;  %vm638_vm1 = vcmask 1041409  }
  0x1f   : > { %595 = vmatpush.msra.mxu2 %v574_v32  ;;  %615 = vmatpush.msra.mxu3 %v575_v33  ;;  %v735_v38 = vld [vmem:[%s1722_s8 + $0xf8] sm:$0xff]  ;;  %v718_v39 = vld [vmem:[%s1722_s8 + $0x70] sm:$0xff]  ;;  %v717_v41 = vld [vmem:[%s1722_s8 + $0x68] sm:$0xff]  ;;  %vm640_vm2 = vcmask 1042434   ;;  %vm642_vm3 = vcmask 1043459   ;;  %vm644_vm4 = vcmask 1044484  }
  0x20   : > { %s1451_s14 = sshll.u32 %s483_s13, 3  ;;  %s1150_s15 = sshll.u32 %s483_s13, 6  ;;  %738 = vmatpush.msra.mxu0 %v719_v37  ;;  %758 = vmatpush.msra.mxu1 %v735_v38  ;;  %v734_v40 = vld [vmem:[%s1722_s8 + $0xf0] sm:$0xff]  ;;  %v733_v42 = vld [vmem:[%s1722_s8 + $0xe8] sm:$0xff]  ;;  %v716_v43 = vld [vmem:[%s1722_s8 + $0x60] sm:$0xff]  ;;  %v629_v57 = vand.u32 127, %v628_v52 }
  0x21   : > { %s488_s18 = scalar_lea.vmem %s1735_s0, %s1451_s14  ;;  %s1460_s29 = scalar_lea.vmem %s1736_s1, %s1150_s15  ;;  %v572_v35 = vld [vmem:[%s1738_s5] sm:$0xff]  ;;  %v573_v36 = vld [vmem:[%s1738_s5 + $0x8] sm:$0xff]  ;;  %v715_v45 = vld [vmem:[%s1722_s8 + $0x58] sm:$0xff]  ;;  %vm646_vm5 = vcmask 1045509   ;;  %vm648_vm6 = vcmask 1046534   ;;  %vm650_vm7 = vcmask 1047559  }
  0x22   : > { %v513_v0 = vld [vmem:[%s488_s18] sm:$0xff]  ;;  %v1466_v6 = vld [vmem:[%s1460_s29 + $0x10] sm:$0xff]  ;;  %v1475_v16 = vld [vmem:[%s1460_s29 + $0x8] sm:$0xff]  ;;  %s505_s15 = scalar_lea.vmem %s1737_s2, %s1451_s14  ;;  %669 = vmatpush.msrb.mxu2 %v572_v35  ;;  %689 = vmatpush.msrb.mxu3 %v573_v36  ;;  %s1740_s4 = sld [smem:[#allocation13_spill]] }
  0x23   : > { %v1463_v1 = vld [vmem:[%s1460_s29] sm:$0xff]  ;;  %v532_v2 = vperm.slane %v513_v0, 0  ;;  %v526_v3 = vrot.slane %v513_v0, 2  ;;  %v528_v4 = vrot.slane %v513_v0, 4  ;;  %v525_v5 = vrot.slane %v513_v0, 1  ;;  %v1478_v19 = vld [vmem:[%s1460_s29 + $0x18] sm:$0xff]  ;;  %739 = vmatpush.msra.mxu0 %v718_v39  ;;  %759 = vmatpush.msra.mxu1 %v734_v40  ;;  %s512_s13 = scalar_lea.vmem %s1739_s3, %s1451_s14 }
  0x24   : > { %v1469_v7 = vld [vmem:[%s1460_s29 + $0x20] sm:$0xff]  ;;  %v527_v8 = vrot.slane %v513_v0, 3  ;;  %v529_v12 = vrot.slane %v513_v0, 5  ;;  %v1481_v20 = vld [vmem:[%s1460_s29 + $0x28] sm:$0xff]  ;;  %v530_v22 = vrot.slane %v513_v0, 6  ;;  %v531_v25 = vrot.slane %v513_v0, 7 }
  0x25   : > { %v548_v9 = vmul.f32 %v532_v2, %v1463_v1  ;;  %v534_v10 = vperm.slane %v526_v3, 0  ;;  %v536_v11 = vperm.slane %v528_v4, 0  ;;  %v533_v15 = vperm.slane %v525_v5, 0  ;;  %v1487_v27 = vld [vmem:[%s1460_s29 + $0x30] sm:$0xff]  ;;  %v1490_v29 = vld [vmem:[%s1460_s29 + $0x38] sm:$0xff]  ;;  %v522_v34 = vld [vmem:[%s505_s15] sm:$0xff]  ;;  %740 = vmatpush.msra.mxu0 %v717_v41  ;;  %760 = vmatpush.msra.mxu1 %v733_v42 }
  0x26   : > { %v535_v17 = vperm.slane %v527_v8, 0  ;;  %v537_v18 = vperm.slane %v529_v12, 0  ;;  %v538_v26 = vperm.slane %v530_v22, 0  ;;  %v539_v28 = vperm.slane %v531_v25, 0  ;;  %1140 = vmatmul.msk.f32.vlgmr.msra.gmra.mxu2 %vm576_vm0, %v522_v34  ;;  %1141 = vmatmul.msk.f32.vlgmr.msra.gmra.mxu3 %vm576_vm0, %v522_v34  ;;  %v732_v44 = vld [vmem:[%s1722_s8 + $0xe0] sm:$0xff]  ;;  %v731_v46 = vld [vmem:[%s1722_s8 + $0xd8] sm:$0xff] }
  0x27   : > { %556 = vadd.xlane.f32.xlu0 %v548_v9  ;;  %v550_v13 = vmul.f32 %v534_v10, %v1466_v6  ;;  %v552_v14 = vmul.f32 %v536_v11, %v1469_v7  ;;  %v549_v21 = vmul.f32 %v533_v15, %v1475_v16  ;;  %741 = vmatpush.msra.mxu0 %v716_v43  ;;  %v714_v47 = vld [vmem:[%s1722_s8 + $0x50] sm:$0xff]  ;;  %v713_v50 = vld [vmem:[%s1722_s8 + $0x48] sm:$0xff]  ;;  %v712_v55 = vld [vmem:[%s1722_s8 + $0x40] sm:$0xff]  ;;  %s1635_s14 = scalar_lea.vmem [#allocation3], %s1726_s17  ;;  %s1146_s0 = sshll.u32 %s1321_s22, 3 }
  0x28   : > { %v551_v23 = vmul.f32 %v535_v17, %v1478_v19  ;;  %v553_v24 = vmul.f32 %v537_v18, %v1481_v20  ;;  %v554_v30 = vmul.f32 %v538_v26, %v1487_v27  ;;  %v555_v31 = vmul.f32 %v539_v28, %v1490_v29  ;;  %761 = vmatpush.msra.mxu1 %v732_v44  ;;  %v730_v48 = vld [vmem:[%s1722_s8 + $0xd0] sm:$0xff]  ;;  %v729_v51 = vld [vmem:[%s1722_s8 + $0xc8] sm:$0xff]  ;;  %v728_v56 = vld [vmem:[%s1722_s8 + $0xc0] sm:$0xff]  ;;  %s955_s29 = scalar_lea.hbm %s1724_s10, %s1146_s0  ;;  %s957_s27 = sshll.u32 %s1635_s14, 4  ;;  %s958_s27 = int_to_ptr.vmem [resolvable:$true] %s957_s27 }
  0x29   : > { %560 = vadd.xlane.f32.xlu1 %v550_v13  ;;  %564 = vadd.xlane.f32.xlu2 %v552_v14  ;;  %v711_v18 = vld [vmem:[%s1722_s8 + $0x38] sm:$0xff]  ;;  %v710_v22 = vld [vmem:[%s1722_s8 + $0x30] sm:$0xff]  ;;  %v725_v25 = vld [vmem:[%s1722_s8 + $0xa8] sm:$0xff]  ;;  %s939_s15 = scalar_lea.sflag [#allocation4], %s1626_s16  ;;  %s1239_s3 = scalar_lea.hbm %s1724_s10, 16 }
  0x2a   : > { %742 = vmatpush.msra.mxu0 %v715_v45  ;;  %762 = vmatpush.msra.mxu1 %v731_v46  ;;  %v708_v26 = vld [vmem:[%s1722_s8 + $0x20] sm:$0xff]  ;;  %v706_v32 = vld [vmem:[%s1722_s8 + $0x10] sm:$0xff]  ;;  %v705_v34 = vld [vmem:[%s1722_s8 + $0x8] sm:$0xff] }
  0x2b   : > { %v724_v28 = vld [vmem:[%s1722_s8 + $0xa0] sm:$0xff]  ;;  %v722_v33 = vld [vmem:[%s1722_s8 + $0x90] sm:$0xff]  ;;  %v721_v35 = vld [vmem:[%s1722_s8 + $0x88] sm:$0xff] }
  0x2c   : > { %743 = vmatpush.msra.mxu0 %v714_v47  ;;  %763 = vmatpush.msra.mxu1 %v730_v48  ;;  %v704_v36 = vld [vmem:[%s1722_s8] sm:$0xff] }
  0x2d   : > { %v720_v37 = vld [vmem:[%s1722_s8 + $0x80] sm:$0xff] }
  0x2e   : > { %744 = vmatpush.msra.mxu0 %v713_v50  ;;  %764 = vmatpush.msra.mxu1 %v729_v51  ;;  %v694_v40 = vld [vmem:[%s1721_s7] sm:$0x3]  ;;  %v737_v51 = vstv %s736_s25 }
  0x2f   : > { %558 = vadd.xlane.f32.xlu0 %v549_v21  ;;  %v727_v21 = vld [vmem:[%s1722_s8 + $0xb8] sm:$0xff]  ;;  %v696_v41 = vperm.slane %v694_v40, 0  ;;  %v697_v42 = vperm.slane %v694_v40, 1 }
  0x30   : > { %745 = vmatpush.msra.mxu0 %v712_v55  ;;  %765 = vmatpush.msra.mxu1 %v728_v56  ;;  %v1214_v56 = vld [vmem:[%s1740_s4] ss:$0 sm:$0xff] }
  0x31   : > { %562 = vadd.xlane.f32.xlu1 %v551_v23  ;;  %566 = vadd.xlane.f32.xlu2 %v553_v24  ;;  %v726_v23 = vld [vmem:[%s1722_s8 + $0xb0] sm:$0xff]  ;;  %v709_v24 = vld [vmem:[%s1722_s8 + $0x28] sm:$0xff] }
  0x32   : > { %746 = vmatpush.msra.mxu0 %v711_v18  ;;  %766 = vmatpush.msra.mxu1 %v727_v21 }
  0x34   : > { %747 = vmatpush.msra.mxu0 %v710_v22  ;;  %767 = vmatpush.msra.mxu1 %v726_v23 }
  0x36   : > { %748 = vmatpush.msra.mxu0 %v709_v24  ;;  %768 = vmatpush.msra.mxu1 %v725_v25 }
  0x37   : > { %568 = vadd.xlane.f32.xlu0 %v554_v30  ;;  %v707_v30 = vld [vmem:[%s1722_s8 + $0x18] sm:$0xff] }
  0x38   : > { %749 = vmatpush.msra.mxu0 %v708_v26  ;;  %769 = vmatpush.msra.mxu1 %v724_v28 }
  0x39   : > { %570 = vadd.xlane.f32.xlu1 %v555_v31  ;;  %v723_v31 = vld [vmem:[%s1722_s8 + $0x98] sm:$0xff] }
  0x3a   : > { %750 = vmatpush.msra.mxu0 %v707_v30  ;;  %770 = vmatpush.msra.mxu1 %v723_v31 }
  0x3c   : > { %751 = vmatpush.msra.mxu0 %v706_v32  ;;  %771 = vmatpush.msra.mxu1 %v722_v33 }
  0x3e   : > { %752 = vmatpush.msra.mxu0 %v705_v34  ;;  %772 = vmatpush.msra.mxu1 %v721_v35 }
  0x40   : > { %753 = vmatpush.msra.mxu0 %v704_v36  ;;  %773 = vmatpush.msra.mxu1 %v720_v37 }
  0x9a   : > { %v557_v49 = vpop.xlane.xlu0 %556 }
  0x9b   : > { %v630_v59 = vperm.slane %v557_v49, %v629_v57 }
  0x9c   : > { %v561_v53 = vpop.xlane.xlu1 %560  ;;  %v565_v54 = vpop.xlane.xlu2 %564 }
  0x9d   : > { %v632_v61 = vperm.slane %v561_v53, %v629_v57  ;;  %v634_v4 = vperm.slane %v565_v54, %v629_v57  ;;  %v523_v53 = vld [vmem:[%s512_s13] sm:$0xff]  ;;  %s959_s13 = sshll.u32 %s955_s29, 4  ;;  %s960_s13 = int_to_ptr.hbm [resolvable:$true] %s959_s13 }
  0x9e   : > { %vm778_vm8 = vcmp.gt.f32.partialorder %v523_v53, 0.0  ;;  %s1233_s18 = sshra.s32 %s960_s13, 4  ;;  %s1234_s18 = int_to_ptr.hbm [resolvable:$true] %s1233_s18 }
  0x9f   : > { %s1235_s17 = scalar_lea.hbm %s1234_s18, 8  ;;  %p1240_p1 = scmp.lt.s32.totalorder %s1234_s18, %s1724_s10 }
  0xa0   : > { %p1236_p12 = scmp.ne.s32.totalorder %s1234_s18, %s1235_s17  ;;  %p1241_p2 = scmp.lt.s32.totalorder %s1239_s3, %s1235_s17 }
  0xa2   : > { %v559_v58 = vpop.xlane.xlu0 %558  ;;  %p1237_p13 = pnand %p1236_p12, %p1434_p4  ;;  %p1242_p3 = por %p1241_p2, %p1240_p1 }
  0xa3   : > { %v631_v60 = vperm.slane %v559_v58, %v629_v57 }
  0xa4   : > { %v563_v62 = vpop.xlane.xlu1 %562  ;;  %v567_v2 = vpop.xlane.xlu2 %566  ;;  %p1238_p0 = pneg %p1237_p13 }
  0xa5   : > { %v639_v63 = vsel %vm638_vm1, %v631_v60, %v630_v59  ;;  %v633_v0 = vperm.slane %v563_v62, %v629_v57  ;;  %v635_v8 = vperm.slane %v567_v2, %v629_v57 }
  0xa6   : > { %v641_v3 = vsel %vm640_vm2, %v632_v61, %v639_v63  ;;  %p1243_p5 = pnand %p1242_p3, %p1238_p0 }
  0xa7   : > { %v643_v5 = vsel %vm642_vm3, %v633_v0, %v641_v3  ;;  %v811_v3 = vshrl.u32 %v628_v52, 7 }
  0xa8   : > { %v645_v9 = vsel %vm644_vm4, %v634_v4, %v643_v5 }
  0xa9   : > { %v647_v12 = vsel %vm646_vm5, %v635_v8, %v645_v9  ;;  %v597_v38 = vpop.f32.mrf.mxu2  ;;  %v617_v39 = vpop.f32.mrf.mxu3  ;;  %1213 = vset.pattern.permute.xlu0 %v811_v3  ;;  %1212 = vset.pattern.permute.xlu2 %v811_v3 }
  0xaa   : > { %v569_v10 = vpop.xlane.xlu0 %568  ;;  %1211 = vset.pattern.permute.xlu1 %v811_v3 }
  0xab   : > { %v636_v11 = vperm.slane %v569_v10, %v629_v57 }
  0xac   : > { %v571_v13 = vpop.xlane.xlu1 %570 }
  0xad   : > { %v649_v14 = vsel %vm648_vm6, %v636_v11, %v647_v12  ;;  %v637_v15 = vperm.slane %v571_v13, %v629_v57 }
  0xaf   : > { %v651_v17 = vsel %vm650_vm7, %v637_v15, %v649_v14 }
  0xb0   : > { %1142 = vmatmul.msk.f32.vlgmr.msrb.gmra.mxu2 %vm576_vm0, %v651_v17  ;;  %1143 = vmatmul.msk.f32.vlgmr.msrb.gmra.mxu3 %vm576_vm0, %v651_v17 }
 0x133   : > { %v671_v43 = vpop.f32.mrf.mxu2  ;;  %v691_v44 = vpop.f32.mrf.mxu3 }
 0x134   : > { %v672_v45 = vadd.f32 %v671_v43, %v597_v38  ;;  %v692_v46 = vadd.f32 %v691_v44, %v617_v39 }
 0x136   : > { %v700_v47 = vadd.f32 %v696_v41, %v672_v45  ;;  %v701_v48 = vadd.f32 %v697_v42, %v692_v46 }
 0x138   : > { %v702_v49 = vmax.f32 %v700_v47, 0.0  ;;  %v703_v50 = vmax.f32 %v701_v48, 0.0 }
 0x13a   : > { %754 = vmatmul.f32.vlgmr.msra.gmra.mxu0 %v702_v49  ;;  %774 = vmatmul.f32.vlgmr.msra.gmra.mxu1 %v703_v50 }
 0x1b7   : > { %v755_v54 = vpop.f32.mrf.mxu0  ;;  %v775_v57 = vpop.f32.mrf.mxu1 }
 0x1b8   : > { %v756_v55 = vadd.f32 %v755_v54, %v737_v51 }
 0x1ba   : > { %v776_v58 = vadd.f32 %v775_v57, %v756_v55 }
 0x1bc   : > { %v783_v59 = vsel %vm778_vm8, %v776_v58, %v1214_v56 }
 0x1bd   : > { %v785_v60 = vsel %vm576_vm0, %v783_v59, -inf  ;;  %784 = vst.msk [vmem:[%s1635_s14] sm:$0xff] %vm576_vm0, %v783_v59 }
 0x1be   : > { %786 = vmax.xlane.f32.xlu2 %v785_v60 }
 0x231   : > { %v787_v61 = vpop.xlane.xlu2 %786 }
 0x232   : > { %v788_v62 = vsub.f32 %v783_v59, %v787_v61 }
 0x234   : > { %v789_v63 = vmul.f32 1.442695, %v788_v62 }
 0x236   : > { %1215 = vpow2.f32 %v789_v63 }
 0x23c   : > { %v1216_v0 = vpop.eup %1215 }
 0x23d   : > { %v791_v2 = vsel %vm576_vm0, %v1216_v0, 0.0 }
 0x23e   : > { %792 = vadd.xlane.f32.xlu0 %v791_v2 }
 0x2b1   : > { %v793_v4 = vpop.xlane.xlu0 %792 }
 0x2b2   : > { %1217 = vrcp.f32 %v793_v4  ;;  %v805_v10 = vand.u32 2147483648, %v793_v4  ;;  %v803_v12 = vand.u32 2147483647, %v793_v4  ;;  %vm799_vm10 = vweird.f32 %v793_v4 }
 0x2b4   : > { %v806_v14 = vor.u32 1.1754944e-38, %v805_v10  ;;  %vm804_vm12 = vcmp.eq.f32.partialorder %v803_v12, 8.507059e+37 }
 0x2b8   : > { %v1218_v5 = vpop.eup %1217 }
 0x2b9   : > { %v795_v8 = vmul.f32 %v1218_v5, %v793_v4  ;;  %vm800_vm9 = vweird.f32 %v1218_v5 }
 0x2ba   : > { %vm801_vm11 = vmor %vm799_vm10, %vm800_vm9 }
 0x2bb   : > { %v796_v9 = vsub.f32 1.0, %v795_v8 }
 0x2bd   : > { %v797_v11 = vmul.f32 %v1218_v5, %v796_v9 }
 0x2bf   : > { %v798_v13 = vadd.f32 %v1218_v5, %v797_v11 }
 0x2c1   : > { %v802_v15 = vsel %vm801_vm11, %v1218_v5, %v798_v13 }
 0x2c2   : > { %v807_v52 = vsel %vm804_vm12, %v806_v14, %v802_v15 }
 0x2c3   : > { %v808_v17 = vmul.f32 %v1216_v0, %v807_v52 }
 0x2c5   : > { %v823_v18 = vperm.slane %v808_v17, 2  ;;  %v816_v21 = vperm.slane %v808_v17, 1  ;;  %v809_v22 = vperm.slane %v808_v17, 0  ;;  %v830_v23 = vperm.slane %v808_v17, 3 }
 0x2c6   : > { %v837_v24 = vperm.slane %v808_v17, 4  ;;  %v844_v25 = vperm.slane %v808_v17, 5  ;;  %v851_v26 = vperm.slane %v808_v17, 6 }
 0x2c7   : > { %828 = vperm.xlu0 %1213, %v823_v18   ;;  %821 = vperm.xlu2 %1212, %v816_v21  }
 0x2c8   : > { %814 = vperm.xlu1 %1211, %v809_v22  }
 0x2cf   : > { %835 = vperm.xlu2 %1212, %v830_v23  }
 0x2d0   : > { %842 = vperm.xlu1 %1211, %v837_v24  }
 0x2d7   : > { %849 = vperm.xlu2 %1212, %v844_v25  }
 0x2d8   : > { %856 = vperm.xlu1 %1211, %v851_v26  }
 0x2d9   : > { %1246 = shalt.err (!%p1243_p5)
}
 0x2da   : > { %1151 = dma.vmem_to_hbm [thread:$0]  (%p1434_p4), %s958_s27, 128, %s960_s13, %s939_s15   ;;  %v858_v28 = vperm.slane %v808_v17, 7 }
 0x2db   : > { %s970_s3 = scalar_lea.hbm %s1725_s11, %s1146_s0  ;;  %s1741_s4 = sshll.u32 %s1626_s16, 3 }
 0x2dc   : > { %s481_s5 = scalar_lea.vmem [#allocation5], %s1741_s4  ;;  %s974_s14 = sshll.u32 %s970_s3, 4  ;;  %s975_s14 = int_to_ptr.hbm [resolvable:$true] %s974_s14 }
 0x2dd   : > { %s972_s17 = sshll.u32 %s481_s5, 4  ;;  %s944_s22 = scalar_lea.sflag [#allocation6], %s1626_s16  ;;  %s973_s17 = int_to_ptr.vmem [resolvable:$true] %s972_s17 }
 0x2de   : > { %s1261_s0 = sshra.s32 %s975_s14, 4  ;;  %s1267_s27 = scalar_lea.hbm %s1725_s11, 16  ;;  %s1262_s0 = int_to_ptr.hbm [resolvable:$true] %s1261_s0 }
 0x2df   : > { %863 = vperm.xlu2 %1212, %v858_v28   ;;  %s1263_s9 = scalar_lea.hbm %s1262_s0, 8  ;;  %p1268_p10 = scmp.lt.s32.totalorder %s1262_s0, %s1725_s11 }
 0x2e0   : > { %p1264_p6 = scmp.ne.s32.totalorder %s1262_s0, %s1263_s9  ;;  %p1269_p11 = scmp.lt.s32.totalorder %s1267_s27, %s1263_s9 }
 0x2e2   : > { %p1265_p7 = pnand %p1264_p6, %p1434_p4  ;;  %p1270_p12 = por %p1269_p11, %p1268_p10 }
 0x2e4   : > { %p1266_p9 = pneg %p1265_p7 }
 0x2e6   : > { %p1271_p13 = pnand %p1270_p12, %p1266_p9 }
 0x321   : > { %v822_v30 = vpop.permute.xlu2 %821 }
 0x322   : > { %v866_v33 = vmul.f32 %v822_v30, %v1475_v16 }
 0x324   : > { %v879_v34 = vrot.slane %v866_v33, 4 }
 0x326   : > { %v880_v40 = vadd.f32 %v879_v34, %v866_v33 }
 0x328   : > { %v881_v48 = vrot.slane %v880_v40, 2 }
 0x329   : > { %v836_v31 = vpop.permute.xlu2 %835 }
 0x32a   : > { %v868_v36 = vmul.f32 %v836_v31, %v1478_v19  ;;  %v882_v54 = vadd.f32 %v881_v48, %v880_v40 }
 0x32c   : > { %v891_v44 = vrot.slane %v868_v36, 4  ;;  %v883_v61 = vrot.slane %v882_v54, 1 }
 0x32e   : > { %v892_v19 = vadd.f32 %v891_v44, %v868_v36 }
 0x330   : > { %v893_v58 = vrot.slane %v892_v19, 2 }
 0x331   : > { %v850_v32 = vpop.permute.xlu2 %849 }
 0x332   : > { %v870_v45 = vmul.f32 %v850_v32, %v1481_v20  ;;  %v894_v0 = vadd.f32 %v893_v58, %v892_v19 }
 0x334   : > { %v903_v51 = vrot.slane %v870_v45, 4  ;;  %v895_v13 = vrot.slane %v894_v0, 1 }
 0x336   : > { %v904_v59 = vadd.f32 %v903_v51, %v870_v45  ;;  %v896_v23 = vadd.f32 %v895_v13, %v894_v0 }
 0x338   : > { %v905_v2 = vrot.slane %v904_v59, 2 }
 0x339   : > { %v829_v35 = vpop.permute.xlu0 %828  ;;  %v864_v42 = vpop.permute.xlu2 %863 }
 0x33a   : > { %v867_v37 = vmul.f32 %v829_v35, %v1466_v6  ;;  %v815_v38 = vpop.permute.xlu1 %814  ;;  %v872_v16 = vmul.f32 %v864_v42, %v1490_v29  ;;  %v906_v14 = vadd.f32 %v905_v2, %v904_v59 }
 0x33b   : > { %v865_v39 = vmul.f32 %v815_v38, %v1463_v1 }
 0x33c   : > { %v885_v41 = vrot.slane %v867_v37, 4  ;;  %v915_v55 = vrot.slane %v872_v16, 4  ;;  %v907_v24 = vrot.slane %v906_v14, 1 }
 0x33d   : > { %v873_v43 = vrot.slane %v865_v39, 4 }
 0x33e   : > { %v886_v46 = vadd.f32 %v885_v41, %v867_v37  ;;  %v916_v62 = vadd.f32 %v915_v55, %v872_v16  ;;  %v908_v31 = vadd.f32 %v907_v24, %v906_v14 }
 0x33f   : > { %v874_v47 = vadd.f32 %v873_v43, %v865_v39 }
 0x340   : > { %v887_v49 = vrot.slane %v886_v46, 2  ;;  %v917_v9 = vrot.slane %v916_v62, 2 }
 0x341   : > { %v875_v50 = vrot.slane %v874_v47, 2 }
 0x342   : > { %v843_v6 = vpop.permute.xlu1 %842  ;;  %v888_v56 = vadd.f32 %v887_v49, %v886_v46  ;;  %v918_v17 = vadd.f32 %v917_v9, %v916_v62 }
 0x343   : > { %v876_v53 = vadd.f32 %v875_v50, %v874_v47  ;;  %v869_v1 = vmul.f32 %v843_v6, %v1469_v7  ;;  %v884_v7 = vadd.f32 %v883_v61, %v882_v54 }
 0x344   : > { %v889_v63 = vrot.slane %v888_v56, 1  ;;  %v919_v25 = vrot.slane %v918_v17, 1 }
 0x345   : > { %v897_v57 = vrot.slane %v869_v1, 4  ;;  %v877_v20 = vrot.slane %v876_v53, 1 }
 0x346   : > { %v890_v10 = vadd.f32 %v889_v63, %v888_v56  ;;  %v920_v33 = vadd.f32 %v919_v25, %v918_v17 }
 0x347   : > { %v898_v60 = vadd.f32 %v897_v57, %v869_v1  ;;  %v878_v3 = vadd.f32 %v877_v20, %v876_v53 }
 0x349   : > { %v899_v29 = vrot.slane %v898_v60, 2  ;;  %v929_v15 = vsel %vm638_vm1, %v884_v7, %v878_v3 }
 0x34a   : > { %v857_v4 = vpop.permute.xlu1 %856  ;;  %v930_v18 = vsel %vm640_vm2, %v890_v10, %v929_v15 }
 0x34b   : > { %v900_v5 = vadd.f32 %v899_v29, %v898_v60  ;;  %v871_v8 = vmul.f32 %v857_v4, %v1487_v27  ;;  %v931_v26 = vsel %vm642_vm3, %v896_v23, %v930_v18 }
 0x34d   : > { %v901_v11 = vrot.slane %v900_v5, 1  ;;  %v909_v12 = vrot.slane %v871_v8, 4 }
 0x34f   : > { %v910_v52 = vadd.f32 %v909_v12, %v871_v8  ;;  %v902_v21 = vadd.f32 %v901_v11, %v900_v5 }
 0x351   : > { %v911_v22 = vrot.slane %v910_v52, 2  ;;  %v932_v28 = vsel %vm644_vm4, %v902_v21, %v931_v26 }
 0x352   : > { %v933_v34 = vsel %vm646_vm5, %v908_v31, %v932_v28 }
 0x353   : > { %v912_v27 = vadd.f32 %v911_v22, %v910_v52 }
 0x355   : > { %v913_v30 = vrot.slane %v912_v27, 1 }
 0x357   : > { %v914_v32 = vadd.f32 %v913_v30, %v912_v27 }
 0x359   : > { %v934_v35 = vsel %vm648_vm6, %v914_v32, %v933_v34 }
 0x35a   : > { %v935_v36 = vsel %vm650_vm7, %v920_v33, %v934_v35 }
 0x35b   : > { %937 = vst [vmem:[%s481_s5] sm:$0xff] %v935_v36 }
 0x35c   : > { %1274 = shalt.err (!%p1271_p13)
}
 0x35d   : > { %1152 = dma.vmem_to_hbm [thread:$0]  (%p1434_p4), %s973_s17, 128, %s975_s14, %s944_s22  }
 0x35e PF: > { %p1162_p0 = scmp.ge.s32.totalorder %s1329_s24, 2  ;;  %s986_s16 = sand.u32 1, %s1309_s19  }
 0x35f   : > { %s987_s18 = scalar_lea.sflag [#allocation4], %s986_s16 }
 0x360   : > { %p1156_p1 = pnand %p1162_p0, %p1441_p8 }
 0x362   : > { %p1157_p2 = pneg %p1156_p1 }
 0x364   : > { %1300 = dma.done.wait (%p1157_p2), %s987_s18, 128  }
 0x365   : > { %1302 = vsyncadd (%p1157_p2), %s987_s18, 4294967168  ;;  %s997_s1 = scalar_lea.sflag [#allocation6], %s986_s16 }
 0x366   : > { %1304 = dma.done.wait (%p1157_p2), %s997_s1, 128  }
 0x367   : > { %1306 = vsyncadd (%p1157_p2), %s997_s1, 4294967168  ;;  %s29_s24 = sadd.s32 1, %s1329_s24   ;;  %s1742_s19 = smov %s1313_s20 }
 0x368   : > { %p26_p3 = scmp.ge.s32.totalorder %s29_s24, 4   ;;  %s1743_s20 = smov %s1317_s21 }
 0x369   : > { %s1744_s21 = smov %s1447_s12  ;;  %s1745_s22 = smov %s1325_s23 }
 0x36a   : > { %s1746_s23 = smov %s1748_s26  ;;  %28 = sbr.rel (!%p26_p3) target bundleno = 14 (0xe), region = 121 }
 0x36f   :  { %1003 = vsyncpa [#allocation4], 1 }
 0x370   :  { %1005 = vsyncpa [#allocation4 + $0x1], 1 }
 0x371   :  { %1006 = vsyncpa [#allocation6], 1 }
 0x372   :  { %1008 = vsyncpa [#allocation6 + $0x1], 1 }

</bundles_post_ra>
